<compile_context>
chip_gen: v5e
topology: v5e:2x2
jax: 0.10.0
libtpu: 0.0.40
codegen_flags: <defaults>
</compile_context>

<pallas_src>
import jax
import jax.numpy as jnp
from jax.experimental import pallas as pl
from jax.experimental.pallas import tpu as pltpu


def _round_up(n, m):
    return ((n + m - 1) // m) * m


def _sublane_multiple(dtype):
    itemsize = jnp.dtype(dtype).itemsize
    if itemsize >= 4:
        return 8
    if itemsize == 2:
        return 16
    return 32


def _num_tensorcores():
    # Only v7x has 2 TensorCores per chip; everything else gets 1.
    try:
        kind = jax.devices()[0].device_kind.lower()
        if "v7" in kind:
            return 2
    except Exception:
        pass
    return 1


def mlp_kernel(x_ref, w1_ref, b1_ref, w2_ref, b2_ref,
               w3_ref, b3_ref, w4_ref, b4_ref, o_ref):
    # fc1..fc3 on the MXU with f32 accumulation; bias + ReLU stay f32 on the
    # VPU (correct on v5e, which has no bf16 VALU, and on v6e/v7x alike).
    h = jnp.dot(x_ref[...], w1_ref[...], preferred_element_type=jnp.float32)
    h = jnp.maximum(h + b1_ref[...], 0.0)
    h = jnp.dot(h.astype(w2_ref.dtype), w2_ref[...],
                preferred_element_type=jnp.float32)
    h = jnp.maximum(h + b2_ref[...], 0.0)
    h = jnp.dot(h.astype(w3_ref.dtype), w3_ref[...],
                preferred_element_type=jnp.float32)
    h = jnp.maximum(h + b3_ref[...], 0.0)
    # fc4 (16 -> 1): VPU broadcast-mul + XLU lane reduce, bias as SMEM scalar.
    # Avoids an N=1 MXU matmul that would waste 127/128 of the output width.
    y = jnp.sum(h * w4_ref[...], axis=-1, keepdims=True) + b4_ref[0]
    # (bm, 1) output: lane-sparse stores, but total output bytes are tiny; a
    # lane-dense (1, bm) layout is only worth it if store slots / output DMA
    # show up on the bundle critical path.
    o_ref[...] = y.astype(o_ref.dtype)


def mlp_forward(x, params, *, bm=None, compute_dtype=None):
    """x: (B, input_size). params: dict from init_params.

    compute_dtype: optional storage dtype for the fc1-fc3 weights (and x), e.g.
    jnp.bfloat16 -- valid on all TPU generations since only the MXU sees it and
    accumulation stays f32.  For the bandwidth win to be real, pass x ALREADY
    in compute_dtype; if x arrives in a different dtype the wrapper will cast
    it, which costs an extra HBM pass over x.  Output is always float32.
    """
    B, D = x.shape

    w1, b1 = params["w1"], params["b1"]
    w2, b2 = params["w2"], params["b2"]
    w3, b3 = params["w3"], params["b3"]
    w4_row, b4 = params["w4_row"], params["b4"]

    if compute_dtype is not None:
        w1 = w1.astype(compute_dtype)
        w2 = w2.astype(compute_dtype)
        w3 = w3.astype(compute_dtype)
        # Biases and the fc4 row stay f32 so the elementwise chain is f32.
        if x.dtype != compute_dtype:
            # Prefer supplying x in compute_dtype from the caller; this cast
            # is a separate XLA pass over x (see module docstring).
            x = x.astype(compute_dtype)

    align = _sublane_multiple(x.dtype)

    # Batch tile: as large as practical (amortizes ~0.35 us per grid step and
    # approaches the HBM roofline), capped at 2048, aligned to the storage
    # dtype's sublane packing.  Only force >= 2 tiles when there are 2
    # TensorCores to shard the "parallel" batch axis across (v7x).
    if bm is None:
        cap = 2048
        if _num_tensorcores() >= 2 and B > 2 * align:
            bm = min(cap, _round_up(pl.cdiv(B, 2), align))
        else:
            bm = min(cap, max(align, (B // align) * align))
    assert bm % align == 0, (
        f"bm={bm} must be a multiple of {align} for dtype {x.dtype}")

    n_tiles = pl.cdiv(B, bm)

    const = lambda a: pl.BlockSpec(a.shape, lambda i: (0, 0))

    out = pl.pallas_call(
        mlp_kernel,
        out_shape=jax.ShapeDtypeStruct((B, 1), jnp.float32),
        grid_spec=pltpu.PrefetchScalarGridSpec(
            num_scalar_prefetch=0,
            grid=(n_tiles,),
            in_specs=[
                # x: batch-tiled; the final block may be partial -- OOB rows
                # are unspecified but only affect never-written output rows.
                pl.BlockSpec((bm, D), lambda i: (i, 0)),
                const(w1), const(b1),                             # fc1
                const(w2), const(b2),                             # fc2
                const(w3), const(b3),                             # fc3
                const(w4_row),                                    # fc4 row (1,16)
                pl.BlockSpec(memory_space=pltpu.MemorySpace.SMEM),  # fc4 bias
            ],
            out_specs=pl.BlockSpec((bm, 1), lambda i: (i, 0)),
        ),
        compiler_params=pltpu.CompilerParams(
            dimension_semantics=("parallel",),
            # Explicit budget: ~bm*(32+64+32+16)*4 B of activations plus
            # double-buffered x/out tiles and ~18 KiB of weights.  32 MiB is
            # generous headroom and fits v7x's 64 MiB physical VMEM.
            vmem_limit_bytes=32 * 1024 * 1024,
        ),
    )(x, w1, b1, w2, b2, w3, b3, w4_row, b4)

    return out


def init_params(key, input_size, rbm_weights=None):
    """Weights stored transposed (in_features, out_features).

    rbm_weights, if given, must be (64, input_size) (torch fc1.weight layout)
    and is used as fc1's weight, matching `self.fc1.weight.data = rbm_weights`.
    fc4 is stored as a (1, 16) row for the VPU path plus a (1,) scalar bias.
    """
    ks = jax.random.split(key, 8)

    def lin(kw, kb, fan_in, fan_out):
        # torch nn.Linear default init: U(-1/sqrt(fan_in), 1/sqrt(fan_in))
        bound = 1.0 / jnp.sqrt(fan_in)
        w = jax.random.uniform(kw, (fan_in, fan_out), jnp.float32, -bound, bound)
        b = jax.random.uniform(kb, (1, fan_out), jnp.float32, -bound, bound)
        return w, b

    w1, b1 = lin(ks[0], ks[1], input_size, 64)
    if rbm_weights is not None:
        w1 = jnp.asarray(rbm_weights, jnp.float32).T
    w2, b2 = lin(ks[2], ks[3], 64, 32)
    w3, b3 = lin(ks[4], ks[5], 32, 16)
    w4, b4 = lin(ks[6], ks[7], 16, 1)
    return dict(w1=w1, b1=b1, w2=w2, b2=b2, w3=w3, b3=b3,
                w4_row=w4.T,            # (1, 16)
                b4=b4.reshape(1))       # (1,) scalar for SMEM


def mlp_reference(x, p):
    h = jnp.maximum(x @ p["w1"] + p["b1"], 0.0)
    h = jnp.maximum(h @ p["w2"] + p["b2"], 0.0)
    h = jnp.maximum(h @ p["w3"] + p["b3"], 0.0)
    return h @ p["w4_row"].T + p["b4"]


if __name__ == "__main__":
    key = jax.random.PRNGKey(0)
    k_x, k_rbm, k_p = jax.random.split(key, 3)

    input_size = 32
    rbm_weights = 0.1 * jax.random.normal(k_rbm, (64, input_size), jnp.float32)
    params = init_params(k_p, input_size, rbm_weights=rbm_weights)

    # batch deliberately not a power-of-two: exercises the partial-final-block
    # path (no jnp.pad, no dropped rows) and the tile-size heuristic.
    batch = 200
    x = jax.random.normal(k_x, (batch, input_size), jnp.float32)

    # f32 path (works on all generations; default bm heuristic).
    out = jax.block_until_ready(mlp_forward(x, params))
    ref = mlp_reference(x, params)
    assert out.shape == (batch, 1)
    assert jnp.allclose(out, ref, atol=1e-5, rtol=1e-5)

    # bf16 storage path (valid on v5e/v6e/v7x): caller supplies x already in
    # bf16 so the kernel's x DMA is genuinely halved; f32 accumulation keeps
    # accuracy to ~bf16 input rounding.  bm=128 is 16-aligned -> tiles of
    # 128 + a 72-row partial final block.
    x_bf16 = x.astype(jnp.bfloat16)
    out_bf16 = jax.block_until_ready(
        mlp_forward(x_bf16, params, bm=128, compute_dtype=jnp.bfloat16))
    assert out_bf16.shape == (batch, 1)
    assert jnp.allclose(out_bf16, ref, atol=5e-2, rtol=5e-2)

    print("KERNEL_OK")
</pallas_src>

<mosaic_0001>
module attributes {stable_mosaic.version = 11 : i64} {
  func.func @mlp_kernel(%arg0: i32, %arg1: memref<200x32xf32, #tpu.memory_space<vmem>>, %arg2: memref<32x64xf32, #tpu.memory_space<vmem>>, %arg3: memref<1x64xf32, #tpu.memory_space<vmem>>, %arg4: memref<64x32xf32, #tpu.memory_space<vmem>>, %arg5: memref<1x32xf32, #tpu.memory_space<vmem>>, %arg6: memref<32x16xf32, #tpu.memory_space<vmem>>, %arg7: memref<1x16xf32, #tpu.memory_space<vmem>>, %arg8: memref<1x16xf32, #tpu.memory_space<vmem>>, %arg9: memref<1xf32, #tpu.memory_space<smem>>, %arg10: memref<200x1xf32, #tpu.memory_space<vmem>>) attributes {dimension_semantics = [#tpu.dimension_semantics<parallel>], iteration_bounds = array<i64: 1>, scalar_prefetch = 0 : i64, scratch_operands = 0 : i64, tpu.core_type = #tpu.core_type<tc>, window_params = [{transform_indices = @transform_0, window_bounds = array<i64: 200, 32>}, {pipeline_mode = #tpu.pipeline_mode<synchronous>, transform_indices = @transform_1, window_bounds = array<i64: 32, 64>}, {pipeline_mode = #tpu.pipeline_mode<synchronous>, transform_indices = @transform_2, window_bounds = array<i64: 1, 64>}, {pipeline_mode = #tpu.pipeline_mode<synchronous>, transform_indices = @transform_3, window_bounds = array<i64: 64, 32>}, {pipeline_mode = #tpu.pipeline_mode<synchronous>, transform_indices = @transform_4, window_bounds = array<i64: 1, 32>}, {pipeline_mode = #tpu.pipeline_mode<synchronous>, transform_indices = @transform_5, window_bounds = array<i64: 32, 16>}, {pipeline_mode = #tpu.pipeline_mode<synchronous>, transform_indices = @transform_6, window_bounds = array<i64: 1, 16>}, {pipeline_mode = #tpu.pipeline_mode<synchronous>, transform_indices = @transform_7, window_bounds = array<i64: 1, 16>}, {transform_indices = @transform_8, window_bounds = array<i64: 1>}, {transform_indices = @transform_9, window_bounds = array<i64: 200, 1>}]} {
    %c0 = arith.constant 0 : index
    %c0_0 = arith.constant 0 : index
    %0 = vector.load %arg1[%c0, %c0_0] : memref<200x32xf32, #tpu.memory_space<vmem>>, vector<200x32xf32>
    %c0_1 = arith.constant 0 : index
    %c0_2 = arith.constant 0 : index
    %1 = vector.load %arg2[%c0_1, %c0_2] : memref<32x64xf32, #tpu.memory_space<vmem>>, vector<32x64xf32>
    %cst = arith.constant dense<0.000000e+00> : vector<200x64xf32>
    %2 = tpu.matmul %0, %1, %cst {dimension_numbers = #tpu.dot_dimension_numbers<[1], [0], [0], [1], [0, 0, 1, 1], [], []>} : vector<200x32xf32>, vector<32x64xf32>, vector<200x64xf32> -> vector<200x64xf32>
    %c0_3 = arith.constant 0 : index
    %c0_4 = arith.constant 0 : index
    %3 = vector.load %arg3[%c0_3, %c0_4] : memref<1x64xf32, #tpu.memory_space<vmem>>, vector<1x64xf32>
    %4 = vector.broadcast %3 : vector<1x64xf32> to vector<200x64xf32>
    %5 = arith.addf %2, %4 : vector<200x64xf32>
    %cst_5 = arith.constant 0.000000e+00 : f32
    %6 = vector.broadcast %cst_5 : f32 to vector<200x64xf32>
    %7 = arith.maximumf %5, %6 : vector<200x64xf32>
    %c0_6 = arith.constant 0 : index
    %c0_7 = arith.constant 0 : index
    %8 = vector.load %arg4[%c0_6, %c0_7] : memref<64x32xf32, #tpu.memory_space<vmem>>, vector<64x32xf32>
    %cst_8 = arith.constant dense<0.000000e+00> : vector<200x32xf32>
    %9 = tpu.matmul %7, %8, %cst_8 {dimension_numbers = #tpu.dot_dimension_numbers<[1], [0], [0], [1], [0, 0, 1, 1], [], []>} : vector<200x64xf32>, vector<64x32xf32>, vector<200x32xf32> -> vector<200x32xf32>
    %c0_9 = arith.constant 0 : index
    %c0_10 = arith.constant 0 : index
    %10 = vector.load %arg5[%c0_9, %c0_10] : memref<1x32xf32, #tpu.memory_space<vmem>>, vector<1x32xf32>
    %11 = vector.broadcast %10 : vector<1x32xf32> to vector<200x32xf32>
    %12 = arith.addf %9, %11 : vector<200x32xf32>
    %cst_11 = arith.constant 0.000000e+00 : f32
    %13 = vector.broadcast %cst_11 : f32 to vector<200x32xf32>
    %14 = arith.maximumf %12, %13 : vector<200x32xf32>
    %c0_12 = arith.constant 0 : index
    %c0_13 = arith.constant 0 : index
    %15 = vector.load %arg6[%c0_12, %c0_13] : memref<32x16xf32, #tpu.memory_space<vmem>>, vector<32x16xf32>
    %cst_14 = arith.constant dense<0.000000e+00> : vector<200x16xf32>
    %16 = tpu.matmul %14, %15, %cst_14 {dimension_numbers = #tpu.dot_dimension_numbers<[1], [0], [0], [1], [0, 0, 1, 1], [], []>} : vector<200x32xf32>, vector<32x16xf32>, vector<200x16xf32> -> vector<200x16xf32>
    %c0_15 = arith.constant 0 : index
    %c0_16 = arith.constant 0 : index
    %17 = vector.load %arg7[%c0_15, %c0_16] : memref<1x16xf32, #tpu.memory_space<vmem>>, vector<1x16xf32>
    %18 = vector.broadcast %17 : vector<1x16xf32> to vector<200x16xf32>
    %19 = arith.addf %16, %18 : vector<200x16xf32>
    %cst_17 = arith.constant 0.000000e+00 : f32
    %20 = vector.broadcast %cst_17 : f32 to vector<200x16xf32>
    %21 = arith.maximumf %19, %20 : vector<200x16xf32>
    %c0_18 = arith.constant 0 : index
    %c0_19 = arith.constant 0 : index
    %22 = vector.load %arg8[%c0_18, %c0_19] : memref<1x16xf32, #tpu.memory_space<vmem>>, vector<1x16xf32>
    %23 = vector.broadcast %22 : vector<1x16xf32> to vector<200x16xf32>
    %24 = arith.mulf %21, %23 : vector<200x16xf32>
    %cst_20 = arith.constant dense<0.000000e+00> : vector<200xf32>
    %25 = vector.multi_reduction <add>, %24, %cst_20 [1] : vector<200x16xf32> to vector<200xf32>
    %26 = vector.shape_cast %25 : vector<200xf32> to vector<200x1xf32>
    %c0_21 = arith.constant 0 : index
    %27 = memref.load %arg9[%c0_21] : memref<1xf32, #tpu.memory_space<smem>>
    %28 = vector.broadcast %27 : f32 to vector<200x1xf32>
    %29 = arith.addf %26, %28 : vector<200x1xf32>
    %c0_22 = arith.constant 0 : index
    %c0_23 = arith.constant 0 : index
    %30 = vector.load %arg10[%c0_22, %c0_23] : memref<200x1xf32, #tpu.memory_space<vmem>>, vector<200x1xf32>
    tpu.vector_store %arg10[%c0_22, %c0_23], %29 {strides = array<i32>} : memref<200x1xf32, #tpu.memory_space<vmem>>, vector<200x1xf32>,
    return
  }
  func.func @transform_0(%arg0: i32) -> (i32, i32) {
    %c0_i32 = arith.constant 0 : i32
    %c0_i32_0 = arith.constant 0 : i32
    return %arg0, %c0_i32 : i32, i32
  }
  func.func @transform_1(%arg0: i32) -> (i32, i32) {
    %c0_i32 = arith.constant 0 : i32
    %c0_i32_0 = arith.constant 0 : i32
    %c0_i32_1 = arith.constant 0 : i32
    return %c0_i32, %c0_i32_0 : i32, i32
  }
  func.func @transform_2(%arg0: i32) -> (i32, i32) {
    %c0_i32 = arith.constant 0 : i32
    %c0_i32_0 = arith.constant 0 : i32
    %c0_i32_1 = arith.constant 0 : i32
    return %c0_i32, %c0_i32_0 : i32, i32
  }
  func.func @transform_3(%arg0: i32) -> (i32, i32) {
    %c0_i32 = arith.constant 0 : i32
    %c0_i32_0 = arith.constant 0 : i32
    %c0_i32_1 = arith.constant 0 : i32
    return %c0_i32, %c0_i32_0 : i32, i32
  }
  func.func @transform_4(%arg0: i32) -> (i32, i32) {
    %c0_i32 = arith.constant 0 : i32
    %c0_i32_0 = arith.constant 0 : i32
    %c0_i32_1 = arith.constant 0 : i32
    return %c0_i32, %c0_i32_0 : i32, i32
  }
  func.func @transform_5(%arg0: i32) -> (i32, i32) {
    %c0_i32 = arith.constant 0 : i32
    %c0_i32_0 = arith.constant 0 : i32
    %c0_i32_1 = arith.constant 0 : i32
    return %c0_i32, %c0_i32_0 : i32, i32
  }
  func.func @transform_6(%arg0: i32) -> (i32, i32) {
    %c0_i32 = arith.constant 0 : i32
    %c0_i32_0 = arith.constant 0 : i32
    %c0_i32_1 = arith.constant 0 : i32
    return %c0_i32, %c0_i32_0 : i32, i32
  }
  func.func @transform_7(%arg0: i32) -> (i32, i32) {
    %c0_i32 = arith.constant 0 : i32
    %c0_i32_0 = arith.constant 0 : i32
    %c0_i32_1 = arith.constant 0 : i32
    return %c0_i32, %c0_i32_0 : i32, i32
  }
  func.func @transform_8(%arg0: i32) -> i32 {
    %c0_i32 = arith.constant 0 : i32
    %c0_i32_0 = arith.constant 0 : i32
    return %c0_i32 : i32
  }
  func.func @transform_9(%arg0: i32) -> (i32, i32) {
    %c0_i32 = arith.constant 0 : i32
    %c0_i32_0 = arith.constant 0 : i32
    return %arg0, %c0_i32 : i32, i32
  }
}

</mosaic_0001>

<bundles_post_ra>
// kernel: tpu_custom_call.1
= control target key start
LH: loop header
LB: loop body
LE: loop exit
PB: predicated region body
PF: predicated region fallthrough
CT: control target
= control target key end

     0   :  { %vm66_vm0 = vcmask 261120   ;;  %vm271_vm1 = vcmask 523264   ;;  %vm693_vm2 = vcmask 130048   ;;  %vm796_vm3 = vcmask 7168   ;;  %s1444_s1 = inlined_call_operand.vmem [shape: f32[32,64], index: 1, kind: input, shape index: {}]   ;;  %s1445_s0 = inlined_call_operand.vmem [shape: f32[200,32], index: 0, kind: input, shape index: {}]   ;;  %s1446_s2 = inlined_call_operand.vmem [shape: f32[1,64], index: 2, kind: input, shape index: {}]   ;;  %s1447_s3 = inlined_call_operand.vmem [shape: f32[64,32], index: 3, kind: input, shape index: {}]   ;;  %s1448_s4 = inlined_call_operand.vmem [shape: f32[1,32], index: 4, kind: input, shape index: {}]   ;;  %s1449_s5 = inlined_call_operand.vmem [shape: f32[32,16], index: 5, kind: input, shape index: {}]   ;;  %s1450_s6 = inlined_call_operand.vmem [shape: f32[1,16], index: 6, kind: input, shape index: {}]   ;;  %s1451_s7 = inlined_call_operand.vmem [shape: f32[1,16], index: 7, kind: input, shape index: {}]   ;;  %s1452_s8 = inlined_call_operand.<no memory space> [shape: f32[1], index: 8, kind: input, shape index: {}]   ;;  %s1453_s9 = inlined_call_operand.vmem [shape: f32[200,1], index: 9, kind: output, shape index: {}]  }
   0x1   :  { %v61_v0 = vld [vmem:[%s1444_s1 + $0x18] sm:$0xff]  ;;  %v60_v1 = vld [vmem:[%s1444_s1 + $0x10] sm:$0xff]  ;;  %v59_v2 = vld [vmem:[%s1444_s1 + $0x8] sm:$0xff] }
   0x2   :  { %154 = vmatpush.msra.mxu0 %v61_v0  ;;  %901 = vmatpush.msra.mxu3 %v61_v0  ;;  %v58_v3 = vld [vmem:[%s1444_s1] sm:$0xff]  ;;  %v34_v5 = vld [vmem:[%s1445_s0 + $0x8] sm:$0xff]  ;;  %v35_v6 = vld [vmem:[%s1445_s0 + $0x10] sm:$0xff] }
   0x3   :  { %v33_v4 = vld [vmem:[%s1445_s0] sm:$0xff]  ;;  %v36_v7 = vld [vmem:[%s1445_s0 + $0x18] sm:$0xff]  ;;  %v38_v9 = vld [vmem:[%s1445_s0 + $0x28] sm:$0xff] }
   0x4   :  { %155 = vmatpush.msra.mxu0 %v60_v1  ;;  %902 = vmatpush.msra.mxu3 %v60_v1  ;;  %v37_v8 = vld [vmem:[%s1445_s0 + $0x20] sm:$0xff]  ;;  %v39_v10 = vld [vmem:[%s1445_s0 + $0x30] sm:$0xff]  ;;  %v40_v11 = vld [vmem:[%s1445_s0 + $0x38] sm:$0xff] }
   0x5   :  { %v41_v12 = vld [vmem:[%s1445_s0 + $0x40] sm:$0xff]  ;;  %v42_v13 = vld [vmem:[%s1445_s0 + $0x48] sm:$0xff]  ;;  %v43_v14 = vld [vmem:[%s1445_s0 + $0x50] sm:$0xff] }
   0x6   :  { %156 = vmatpush.msra.mxu0 %v59_v2  ;;  %903 = vmatpush.msra.mxu3 %v59_v2  ;;  %v266_v15 = vld [vmem:[%s1447_s3 + $0x38] sm:$0xff]  ;;  %v265_v16 = vld [vmem:[%s1447_s3 + $0x30] sm:$0xff]  ;;  %v264_v17 = vld [vmem:[%s1447_s3 + $0x28] sm:$0xff] }
   0x7   :  { %355 = vmatpush.msra.mxu1 %v266_v15  ;;  %v44_v18 = vld [vmem:[%s1445_s0 + $0x58] sm:$0xff]  ;;  %v263_v19 = vld [vmem:[%s1447_s3 + $0x20] sm:$0xff]  ;;  %v261_v21 = vld [vmem:[%s1447_s3 + $0x10] sm:$0xff] }
   0x8   :  { %157 = vmatpush.msra.mxu0 %v58_v3  ;;  %904 = vmatpush.msra.mxu3 %v58_v3  ;;  %v262_v20 = vld [vmem:[%s1447_s3 + $0x18] sm:$0xff]  ;;  %v45_v22 = vld [vmem:[%s1445_s0 + $0x60] sm:$0xff]  ;;  %v260_v23 = vld [vmem:[%s1447_s3 + $0x8] sm:$0xff] }
   0x9   :  { %826 = vmatmul.msk.f32.vlgmr.msra.gmra.mxu0 %vm66_vm0, %v33_v4  ;;  %356 = vmatpush.msra.mxu1 %v265_v16  ;;  %v259_v24 = vld [vmem:[%s1447_s3] sm:$0xff]  ;;  %v46_v25 = vld [vmem:[%s1445_s0 + $0x68] sm:$0xff]  ;;  %v47_v26 = vld [vmem:[%s1445_s0 + $0x70] sm:$0xff] }
   0xa   :  { %905 = vmatpush.msrb.mxu3 %v266_v15  ;;  %v52_v27 = vld [vmem:[%s1445_s0 + $0x98] sm:$0xff]  ;;  %v53_v29 = vld [vmem:[%s1445_s0 + $0xa0] sm:$0xff]  ;;  %v54_v35 = vld [vmem:[%s1445_s0 + $0xa8] sm:$0xff] }
   0xb   :  { %357 = vmatpush.msra.mxu1 %v264_v17  ;;  %845 = vmatmul.msk.f32.vlgmr.msra.gmra.mxu3 %vm66_vm0, %v52_v27  ;;  %v48_v28 = vld [vmem:[%s1445_s0 + $0x78] sm:$0xff]  ;;  %v1082_v30 = vld [vmem:[%s1446_s2] ss:$0 sm:$0xff]  ;;  %v50_v37 = vld [vmem:[%s1445_s0 + $0x88] sm:$0xff] }
   0xc   :  { %906 = vmatpush.msrb.mxu3 %v265_v16  ;;  %v49_v32 = vld [vmem:[%s1445_s0 + $0x80] sm:$0xff]  ;;  %v55_v40 = vld [vmem:[%s1445_s0 + $0xb0] sm:$0xff]  ;;  %v56_v45 = vld [vmem:[%s1445_s0 + $0xb8] sm:$0xff] }
   0xd   :  { %358 = vmatpush.msra.mxu1 %v263_v19  ;;  %v51_v42 = vld [vmem:[%s1445_s0 + $0x90] sm:$0xff]  ;;  %v57_v49 = vld [vmem:[%s1445_s0 + $0xc0] sm:$0xff]  ;;  %v465_v15 = vld [vmem:[%s1449_s5 + $0x8] sm:$0xff] }
   0xe   :  { %907 = vmatpush.msrb.mxu3 %v264_v17  ;;  %v464_v16 = vld [vmem:[%s1449_s5] sm:$0xff] }
   0xf   :  { %359 = vmatpush.msra.mxu1 %v262_v20 }
  0x10   :  { %908 = vmatpush.msrb.mxu3 %v263_v19 }
  0x11   :  { %827 = vmatmul.msk.f32.gmra.mxu0 %vm66_vm0, %v34_v5  ;;  %360 = vmatpush.msra.mxu1 %v261_v21 }
  0x12   :  { %909 = vmatpush.msrb.mxu3 %v262_v20 }
  0x13   :  { %361 = vmatpush.msra.mxu1 %v260_v23  ;;  %846 = vmatmul.msk.f32.gmra.mxu3 %vm66_vm0, %v53_v29 }
  0x14   :  { %910 = vmatpush.msrb.mxu3 %v261_v21 }
  0x15   :  { %362 = vmatpush.msra.mxu1 %v259_v24 }
  0x16   :  { %911 = vmatpush.msrb.mxu3 %v260_v23 }
  0x18   :  { %912 = vmatpush.msrb.mxu3 %v259_v24 }
  0x19   :  { %828 = vmatmul.msk.f32.gmra.mxu0 %vm66_vm0, %v35_v6 }
  0x1b   :  { %847 = vmatmul.msk.f32.gmra.mxu3 %vm66_vm0, %v54_v35 }
  0x21   :  { %829 = vmatmul.msk.f32.gmra.mxu0 %vm66_vm0, %v36_v7 }
  0x23   :  { %848 = vmatmul.msk.f32.gmra.mxu3 %vm66_vm0, %v55_v40 }
  0x29   :  { %830 = vmatmul.msk.f32.gmra.mxu0 %vm66_vm0, %v37_v8 }
  0x2b   :  { %849 = vmatmul.msk.f32.gmra.mxu3 %vm66_vm0, %v56_v45 }
  0x31   :  { %831 = vmatmul.msk.f32.gmra.mxu0 %vm66_vm0, %v38_v9 }
  0x33   :  { %850 = vmatmul.msk.f32.gmra.mxu3 %vm66_vm0, %v57_v49 }
  0x39   :  { %832 = vmatmul.msk.f32.gmra.mxu0 %vm66_vm0, %v39_v10  ;;  %v467_v10 = vld [vmem:[%s1449_s5 + $0x18] sm:$0xff] }
  0x3a   :  { %559 = vmatpush.msra.mxu2 %v467_v10  ;;  %913 = vmatpush.msra.mxu3 %v467_v10 }
  0x41   :  { %833 = vmatmul.msk.f32.gmra.mxu0 %vm66_vm0, %v40_v11 }
  0x49   :  { %834 = vmatmul.msk.f32.gmra.mxu0 %vm66_vm0, %v41_v12 }
  0x51   :  { %835 = vmatmul.msk.f32.gmra.mxu0 %vm66_vm0, %v42_v13  ;;  %v466_v13 = vld [vmem:[%s1449_s5 + $0x10] sm:$0xff] }
  0x52   :  { %560 = vmatpush.msra.mxu2 %v466_v13  ;;  %914 = vmatpush.msra.mxu3 %v466_v13 }
  0x54   :  { %561 = vmatpush.msra.mxu2 %v465_v15  ;;  %915 = vmatpush.msra.mxu3 %v465_v15 }
  0x56   :  { %562 = vmatpush.msra.mxu2 %v464_v16  ;;  %916 = vmatpush.msra.mxu3 %v464_v16 }
  0x59   :  { %836 = vmatmul.msk.f32.gmra.mxu0 %vm66_vm0, %v43_v14 }
  0x61   :  { %837 = vmatmul.msk.f32.gmra.mxu0 %vm66_vm0, %v44_v18 }
  0x69   :  { %838 = vmatmul.msk.f32.gmra.mxu0 %vm66_vm0, %v45_v22 }
  0x71   :  { %839 = vmatmul.msk.f32.gmra.mxu0 %vm66_vm0, %v46_v25 }
  0x79   :  { %840 = vmatmul.msk.f32.gmra.mxu0 %vm66_vm0, %v47_v26  ;;  %v1159_v26 = vld [vmem:[%s1448_s4] ss:$0 sm:$0xff] }
  0x81   :  { %841 = vmatmul.msk.f32.gmra.mxu0 %vm66_vm0, %v48_v28 }
  0x86   :  { %v159_v31 = vpop.f32.mrf.mxu0 }
  0x87   :  { %v160_v33 = vadd.f32 %v1082_v30, %v159_v31 }
  0x89   :  { %v234_v34 = vmax.f32 %v160_v33, 0.0  ;;  %842 = vmatmul.msk.f32.gmra.mxu0 %vm66_vm0, %v49_v32 }
  0x8b   :  { %851 = vmatmul.msk.f32.vlgmr.msra.gmra.mxu1 %vm271_vm1, %v234_v34 }
  0x8e   :  { %v162_v36 = vpop.f32.mrf.mxu0  ;;  %v216_v35 = vpop.f32.mrf.mxu3 }
  0x8f   :  { %v163_v38 = vadd.f32 %v1082_v30, %v162_v36 }
  0x91   :  { %v235_v39 = vmax.f32 %v163_v38, 0.0  ;;  %843 = vmatmul.msk.f32.gmra.mxu0 %vm66_vm0, %v50_v37 }
  0x93   :  { %852 = vmatmul.msk.f32.gmra.mxu1 %vm271_vm1, %v235_v39 }
  0x96   :  { %v165_v41 = vpop.f32.mrf.mxu0 }
  0x97   :  { %v166_v43 = vadd.f32 %v1082_v30, %v165_v41 }
  0x99   :  { %v236_v44 = vmax.f32 %v166_v43, 0.0  ;;  %844 = vmatmul.msk.f32.gmra.mxu0 %vm66_vm0, %v51_v42 }
  0x9b   :  { %853 = vmatmul.msk.f32.gmra.mxu1 %vm271_vm1, %v236_v44  ;;  %v219_v44 = vpop.f32.mrf.mxu3 }
  0x9e   :  { %v168_v46 = vpop.f32.mrf.mxu0 }
  0x9f   :  { %v169_v47 = vadd.f32 %v1082_v30, %v168_v46 }
  0xa1   :  { %v237_v48 = vmax.f32 %v169_v47, 0.0 }
  0xa3   :  { %854 = vmatmul.msk.f32.gmra.mxu1 %vm271_vm1, %v237_v48  ;;  %v217_v48 = vadd.f32 %v1082_v30, %v216_v35 }
  0xa5   :  { %v253_v49 = vmax.f32 %v217_v48, 0.0  ;;  %v1223_v48 = vld [vmem:[%s1451_s7] ss:$0 sm:$0xff] }
  0xa6   :  { %v171_v50 = vpop.f32.mrf.mxu0 }
  0xa7   :  { %v172_v51 = vadd.f32 %v1082_v30, %v171_v50 }
  0xa9   :  { %v238_v52 = vmax.f32 %v172_v51, 0.0 }
  0xab   :  { %855 = vmatmul.msk.f32.gmra.mxu1 %vm271_vm1, %v238_v52  ;;  %v222_v52 = vpop.f32.mrf.mxu3 }
  0xae   :  { %v174_v53 = vpop.f32.mrf.mxu0 }
  0xaf   :  { %v175_v54 = vadd.f32 %v1082_v30, %v174_v53 }
  0xb1   :  { %v239_v55 = vmax.f32 %v175_v54, 0.0  ;;  %v220_v54 = vadd.f32 %v1082_v30, %v219_v44 }
  0xb3   :  { %856 = vmatmul.msk.f32.gmra.mxu1 %vm271_vm1, %v239_v55  ;;  %v254_v55 = vmax.f32 %v220_v54, 0.0 }
  0xb6   :  { %v177_v56 = vpop.f32.mrf.mxu0 }
  0xb7   :  { %v178_v57 = vadd.f32 %v1082_v30, %v177_v56 }
  0xb9   :  { %v240_v58 = vmax.f32 %v178_v57, 0.0 }
  0xbb   :  { %857 = vmatmul.msk.f32.gmra.mxu1 %vm271_vm1, %v240_v58 }
  0xbe   :  { %v180_v59 = vpop.f32.mrf.mxu0 }
  0xbf   :  { %v181_v60 = vadd.f32 %v1082_v30, %v180_v59  ;;  %v223_v59 = vadd.f32 %v1082_v30, %v222_v52 }
  0xc1   :  { %v241_v61 = vmax.f32 %v181_v60, 0.0  ;;  %v225_v60 = vpop.f32.mrf.mxu3 }
  0xc3   :  { %858 = vmatmul.msk.f32.gmra.mxu1 %vm271_vm1, %v241_v61  ;;  %v255_v61 = vmax.f32 %v223_v59, 0.0 }
  0xc6   :  { %v183_v62 = vpop.f32.mrf.mxu0 }
  0xc7   :  { %v184_v63 = vadd.f32 %v1082_v30, %v183_v62 }
  0xc9   :  { %v242_v0 = vmax.f32 %v184_v63, 0.0 }
  0xcb   :  { %859 = vmatmul.msk.f32.gmra.mxu1 %vm271_vm1, %v242_v0 }
  0xce   :  { %v186_v1 = vpop.f32.mrf.mxu0 }
  0xcf   :  { %v187_v2 = vadd.f32 %v1082_v30, %v186_v1  ;;  %v226_v1 = vadd.f32 %v1082_v30, %v225_v60 }
  0xd1   :  { %v243_v3 = vmax.f32 %v187_v2, 0.0  ;;  %v228_v2 = vpop.f32.mrf.mxu3 }
  0xd3   :  { %860 = vmatmul.msk.f32.gmra.mxu1 %vm271_vm1, %v243_v3  ;;  %v256_v3 = vmax.f32 %v226_v1, 0.0 }
  0xd6   :  { %v189_v4 = vpop.f32.mrf.mxu0 }
  0xd7   :  { %v190_v5 = vadd.f32 %v1082_v30, %v189_v4 }
  0xd9   :  { %v244_v6 = vmax.f32 %v190_v5, 0.0  ;;  %v231_v10 = vpop.f32.mrf.mxu3 }
  0xda   :  { %v232_v13 = vadd.f32 %v1082_v30, %v231_v10 }
  0xdb   :  { %861 = vmatmul.msk.f32.gmra.mxu1 %vm271_vm1, %v244_v6 }
  0xde   :  { %v192_v7 = vpop.f32.mrf.mxu0 }
  0xdf   :  { %v193_v8 = vadd.f32 %v1082_v30, %v192_v7  ;;  %v229_v7 = vadd.f32 %v1082_v30, %v228_v2 }
  0xe1   :  { %v245_v9 = vmax.f32 %v193_v8, 0.0  ;;  %v257_v8 = vmax.f32 %v229_v7, 0.0 }
  0xe3   :  { %862 = vmatmul.msk.f32.gmra.mxu1 %vm271_vm1, %v245_v9 }
  0xe6   :  { %v195_v11 = vpop.f32.mrf.mxu0 }
  0xe7   :  { %v196_v12 = vadd.f32 %v1082_v30, %v195_v11 }
  0xe9   :  { %v246_v14 = vmax.f32 %v196_v12, 0.0 }
  0xeb   :  { %863 = vmatmul.msk.f32.gmra.mxu1 %vm271_vm1, %v246_v14  ;;  %v258_v14 = vmax.f32 %v232_v13, 0.0 }
  0xee   :  { %v198_v17 = vpop.f32.mrf.mxu0 }
  0xef   :  { %v199_v18 = vadd.f32 %v1082_v30, %v198_v17 }
  0xf1   :  { %v247_v19 = vmax.f32 %v199_v18, 0.0 }
  0xf3   :  { %864 = vmatmul.msk.f32.gmra.mxu1 %vm271_vm1, %v247_v19 }
  0xf6   :  { %v201_v20 = vpop.f32.mrf.mxu0 }
  0xf7   :  { %v202_v21 = vadd.f32 %v1082_v30, %v201_v20 }
  0xf9   :  { %v248_v22 = vmax.f32 %v202_v21, 0.0 }
  0xfb   :  { %865 = vmatmul.msk.f32.gmra.mxu1 %vm271_vm1, %v248_v22 }
  0xfe   :  { %v204_v23 = vpop.f32.mrf.mxu0 }
  0xff   :  { %v205_v24 = vadd.f32 %v1082_v30, %v204_v23 }
 0x101   :  { %v249_v25 = vmax.f32 %v205_v24, 0.0 }
 0x103   :  { %866 = vmatmul.msk.f32.gmra.mxu1 %vm271_vm1, %v249_v25 }
 0x106   :  { %v207_v27 = vpop.f32.mrf.mxu0 }
 0x107   :  { %v208_v28 = vadd.f32 %v1082_v30, %v207_v27 }
 0x108   :  { %v364_v29 = vpop.f32.mrf.mxu1 }
 0x109   :  { %v250_v31 = vmax.f32 %v208_v28, 0.0  ;;  %v365_v32 = vadd.f32 %v1159_v26, %v364_v29 }
 0x10b   :  { %v439_v33 = vmax.f32 %v365_v32, 0.0  ;;  %867 = vmatmul.msk.f32.gmra.mxu1 %vm271_vm1, %v250_v31 }
 0x10d   :  { %876 = vmatmul.msk.f32.vlgmr.msra.gmra.mxu2 %vm66_vm0, %v439_v33 }
 0x10e   :  { %v210_v34 = vpop.f32.mrf.mxu0 }
 0x10f   :  { %v211_v36 = vadd.f32 %v1082_v30, %v210_v34 }
 0x110   :  { %v367_v37 = vpop.f32.mrf.mxu1 }
 0x111   :  { %v251_v38 = vmax.f32 %v211_v36, 0.0  ;;  %v368_v39 = vadd.f32 %v1159_v26, %v367_v37 }
 0x113   :  { %v440_v40 = vmax.f32 %v368_v39, 0.0  ;;  %868 = vmatmul.msk.f32.gmra.mxu1 %vm271_vm1, %v251_v38 }
 0x115   :  { %877 = vmatmul.msk.f32.gmra.mxu2 %vm66_vm0, %v440_v40 }
 0x116   :  { %v213_v41 = vpop.f32.mrf.mxu0 }
 0x117   :  { %v214_v42 = vadd.f32 %v1082_v30, %v213_v41 }
 0x118   :  { %v370_v43 = vpop.f32.mrf.mxu1 }
 0x119   :  { %v252_v45 = vmax.f32 %v214_v42, 0.0  ;;  %v371_v46 = vadd.f32 %v1159_v26, %v370_v43  ;;  %v1216_v43 = vld [vmem:[%s1450_s6] ss:$0 sm:$0xff] }
 0x11b   :  { %v441_v47 = vmax.f32 %v371_v46, 0.0  ;;  %869 = vmatmul.msk.f32.vlgmr.msrb.gmra.mxu3 %vm271_vm1, %v252_v45 }
 0x11d   :  { %878 = vmatmul.msk.f32.gmra.mxu2 %vm66_vm0, %v441_v47 }
 0x120   :  { %v373_v50 = vpop.f32.mrf.mxu1 }
 0x121   :  { %v374_v51 = vadd.f32 %v1159_v26, %v373_v50 }
 0x123   :  { %v442_v53 = vmax.f32 %v374_v51, 0.0  ;;  %870 = vmatmul.msk.f32.gmra.mxu3 %vm271_vm1, %v253_v49 }
 0x125   :  { %879 = vmatmul.msk.f32.gmra.mxu2 %vm66_vm0, %v442_v53 }
 0x128   :  { %v376_v56 = vpop.f32.mrf.mxu1 }
 0x129   :  { %v377_v57 = vadd.f32 %v1159_v26, %v376_v56 }
 0x12b   :  { %v443_v58 = vmax.f32 %v377_v57, 0.0  ;;  %871 = vmatmul.msk.f32.gmra.mxu3 %vm271_vm1, %v254_v55 }
 0x12d   :  { %880 = vmatmul.msk.f32.gmra.mxu2 %vm66_vm0, %v443_v58 }
 0x130   :  { %v379_v62 = vpop.f32.mrf.mxu1 }
 0x131   :  { %v380_v63 = vadd.f32 %v1159_v26, %v379_v62 }
 0x133   :  { %v444_v0 = vmax.f32 %v380_v63, 0.0  ;;  %872 = vmatmul.msk.f32.gmra.mxu3 %vm271_vm1, %v255_v61 }
 0x135   :  { %881 = vmatmul.msk.f32.gmra.mxu2 %vm66_vm0, %v444_v0 }
 0x138   :  { %v382_v4 = vpop.f32.mrf.mxu1 }
 0x139   :  { %v383_v5 = vadd.f32 %v1159_v26, %v382_v4 }
 0x13b   :  { %v445_v6 = vmax.f32 %v383_v5, 0.0  ;;  %873 = vmatmul.msk.f32.gmra.mxu3 %vm271_vm1, %v256_v3 }
 0x13d   :  { %882 = vmatmul.msk.f32.gmra.mxu2 %vm66_vm0, %v445_v6 }
 0x140   :  { %v385_v9 = vpop.f32.mrf.mxu1 }
 0x141   :  { %v386_v11 = vadd.f32 %v1159_v26, %v385_v9 }
 0x143   :  { %v446_v12 = vmax.f32 %v386_v11, 0.0  ;;  %874 = vmatmul.msk.f32.gmra.mxu3 %vm271_vm1, %v257_v8 }
 0x145   :  { %883 = vmatmul.msk.f32.gmra.mxu2 %vm66_vm0, %v446_v12 }
 0x148   :  { %v388_v15 = vpop.f32.mrf.mxu1 }
 0x149   :  { %v389_v16 = vadd.f32 %v1159_v26, %v388_v15 }
 0x14b   :  { %v447_v17 = vmax.f32 %v389_v16, 0.0  ;;  %875 = vmatmul.msk.f32.gmra.mxu3 %vm271_vm1, %v258_v14 }
 0x14d   :  { %884 = vmatmul.msk.f32.gmra.mxu2 %vm66_vm0, %v447_v17 }
 0x150   :  { %v391_v18 = vpop.f32.mrf.mxu1 }
 0x151   :  { %v392_v19 = vadd.f32 %v1159_v26, %v391_v18 }
 0x153   :  { %v448_v20 = vmax.f32 %v392_v19, 0.0 }
 0x155   :  { %885 = vmatmul.msk.f32.gmra.mxu2 %vm66_vm0, %v448_v20 }
 0x158   :  { %v394_v21 = vpop.f32.mrf.mxu1 }
 0x159   :  { %v395_v30 = vadd.f32 %v1159_v26, %v394_v21 }
 0x15b   :  { %v449_v22 = vmax.f32 %v395_v30, 0.0 }
 0x15d   :  { %886 = vmatmul.msk.f32.gmra.mxu2 %vm66_vm0, %v449_v22 }
 0x160   :  { %v397_v23 = vpop.f32.mrf.mxu1 }
 0x161   :  { %v398_v24 = vadd.f32 %v1159_v26, %v397_v23 }
 0x163   :  { %v450_v25 = vmax.f32 %v398_v24, 0.0 }
 0x165   :  { %887 = vmatmul.msk.f32.gmra.mxu2 %vm66_vm0, %v450_v25 }
 0x168   :  { %v400_v27 = vpop.f32.mrf.mxu1 }
 0x169   :  { %v401_v28 = vadd.f32 %v1159_v26, %v400_v27 }
 0x16b   :  { %v451_v29 = vmax.f32 %v401_v28, 0.0 }
 0x16d   :  { %888 = vmatmul.msk.f32.gmra.mxu2 %vm66_vm0, %v451_v29 }
 0x170   :  { %v403_v31 = vpop.f32.mrf.mxu1 }
 0x171   :  { %v404_v32 = vadd.f32 %v1159_v26, %v403_v31 }
 0x173   :  { %v452_v33 = vmax.f32 %v404_v32, 0.0 }
 0x175   :  { %889 = vmatmul.msk.f32.gmra.mxu2 %vm66_vm0, %v452_v33 }
 0x178   :  { %v406_v34 = vpop.f32.mrf.mxu1 }
 0x179   :  { %v407_v35 = vadd.f32 %v1159_v26, %v406_v34 }
 0x17b   :  { %v453_v36 = vmax.f32 %v407_v35, 0.0 }
 0x17d   :  { %890 = vmatmul.msk.f32.gmra.mxu2 %vm66_vm0, %v453_v36 }
 0x180   :  { %v409_v37 = vpop.f32.mrf.mxu1 }
 0x181   :  { %v410_v38 = vadd.f32 %v1159_v26, %v409_v37 }
 0x183   :  { %v454_v39 = vmax.f32 %v410_v38, 0.0 }
 0x185   :  { %891 = vmatmul.msk.f32.gmra.mxu2 %vm66_vm0, %v454_v39 }
 0x188   :  { %v412_v40 = vpop.f32.mrf.mxu1 }
 0x189   :  { %v413_v41 = vadd.f32 %v1159_v26, %v412_v40 }
 0x18b   :  { %v455_v42 = vmax.f32 %v413_v41, 0.0 }
 0x18d   :  { %892 = vmatmul.msk.f32.gmra.mxu2 %vm66_vm0, %v455_v42 }
 0x190   :  { %v415_v44 = vpop.f32.mrf.mxu1  ;;  %v564_v45 = vpop.f32.mrf.mxu2 }
 0x191   :  { %v416_v46 = vadd.f32 %v1159_v26, %v415_v44  ;;  %v565_v47 = vadd.f32 %v1216_v43, %v564_v45 }
 0x193   :  { %v456_v49 = vmax.f32 %v416_v46, 0.0  ;;  %v639_v50 = vmax.f32 %v565_v47, 0.0 }
 0x195   :  { %893 = vmatmul.msk.f32.gmra.mxu2 %vm66_vm0, %v456_v49  ;;  %v668_v51 = vmul.f32 %v1223_v48, %v639_v50 }
 0x197   :  { %v694_v52 = vsel %vm693_vm2, %v668_v51, 0.0 }
 0x198   :  { %v567_v53 = vpop.f32.mrf.mxu2  ;;  %695 = vadd.xlane.f32.xlu0 %v694_v52 }
 0x199   :  { %v568_v54 = vadd.f32 %v1216_v43, %v567_v53 }
 0x19b   :  { %v640_v55 = vmax.f32 %v568_v54, 0.0 }
 0x19d   :  { %v669_v56 = vmul.f32 %v1223_v48, %v640_v55 }
 0x19e   :  { %v418_v57 = vpop.f32.mrf.mxu3 }
 0x19f   :  { %v419_v58 = vadd.f32 %v1159_v26, %v418_v57  ;;  %v697_v59 = vsel %vm693_vm2, %v669_v56, 0.0 }
 0x1a0   :  { %v570_v60 = vpop.f32.mrf.mxu2  ;;  %698 = vadd.xlane.f32.xlu0 %v697_v59 }
 0x1a1   :  { %v457_v61 = vmax.f32 %v419_v58, 0.0  ;;  %v571_v62 = vadd.f32 %v1216_v43, %v570_v60 }
 0x1a3   :  { %v641_v63 = vmax.f32 %v571_v62, 0.0  ;;  %894 = vmatmul.msk.f32.gmra.mxu2 %vm66_vm0, %v457_v61 }
 0x1a5   :  { %v670_v0 = vmul.f32 %v1223_v48, %v641_v63 }
 0x1a6   :  { %v421_v1 = vpop.f32.mrf.mxu3 }
 0x1a7   :  { %v422_v2 = vadd.f32 %v1159_v26, %v421_v1  ;;  %v700_v3 = vsel %vm693_vm2, %v670_v0, 0.0 }
 0x1a8   :  { %v573_v4 = vpop.f32.mrf.mxu2  ;;  %701 = vadd.xlane.f32.xlu1 %v700_v3 }
 0x1a9   :  { %v458_v5 = vmax.f32 %v422_v2, 0.0  ;;  %v574_v6 = vadd.f32 %v1216_v43, %v573_v4 }
 0x1ab   :  { %v642_v7 = vmax.f32 %v574_v6, 0.0  ;;  %895 = vmatmul.msk.f32.vlgmr.msra.gmra.mxu3 %vm66_vm0, %v458_v5 }
 0x1ad   :  { %v671_v8 = vmul.f32 %v1223_v48, %v642_v7 }
 0x1ae   :  { %v424_v9 = vpop.f32.mrf.mxu3 }
 0x1af   :  { %v425_v10 = vadd.f32 %v1159_v26, %v424_v9  ;;  %v703_v11 = vsel %vm693_vm2, %v671_v8, 0.0 }
 0x1b0   :  { %v576_v12 = vpop.f32.mrf.mxu2  ;;  %704 = vadd.xlane.f32.xlu1 %v703_v11 }
 0x1b1   :  { %v459_v13 = vmax.f32 %v425_v10, 0.0  ;;  %v577_v14 = vadd.f32 %v1216_v43, %v576_v12 }
 0x1b3   :  { %v643_v15 = vmax.f32 %v577_v14, 0.0  ;;  %896 = vmatmul.msk.f32.gmra.mxu3 %vm66_vm0, %v459_v13 }
 0x1b5   :  { %v672_v16 = vmul.f32 %v1223_v48, %v643_v15 }
 0x1b6   :  { %v427_v17 = vpop.f32.mrf.mxu3 }
 0x1b7   :  { %v428_v18 = vadd.f32 %v1159_v26, %v427_v17  ;;  %v706_v19 = vsel %vm693_vm2, %v672_v16, 0.0 }
 0x1b8   :  { %v579_v20 = vpop.f32.mrf.mxu2  ;;  %707 = vadd.xlane.f32.xlu2 %v706_v19 }
 0x1b9   :  { %v460_v21 = vmax.f32 %v428_v18, 0.0  ;;  %v580_v30 = vadd.f32 %v1216_v43, %v579_v20  ;;  %v1288_v20 = vstv %s1452_s8 }
 0x1bb   :  { %v644_v22 = vmax.f32 %v580_v30, 0.0  ;;  %897 = vmatmul.msk.f32.gmra.mxu3 %vm66_vm0, %v460_v21 }
 0x1bd   :  { %v673_v23 = vmul.f32 %v1223_v48, %v644_v22 }
 0x1be   :  { %v430_v24 = vpop.f32.mrf.mxu3 }
 0x1bf   :  { %v431_v25 = vadd.f32 %v1159_v26, %v430_v24  ;;  %v709_v27 = vsel %vm693_vm2, %v673_v23, 0.0 }
 0x1c0   :  { %v582_v28 = vpop.f32.mrf.mxu2  ;;  %710 = vadd.xlane.f32.xlu2 %v709_v27 }
 0x1c1   :  { %v461_v29 = vmax.f32 %v431_v25, 0.0  ;;  %v583_v31 = vadd.f32 %v1216_v43, %v582_v28 }
 0x1c3   :  { %v645_v32 = vmax.f32 %v583_v31, 0.0  ;;  %898 = vmatmul.msk.f32.gmra.mxu3 %vm66_vm0, %v461_v29 }
 0x1c5   :  { %v674_v33 = vmul.f32 %v1223_v48, %v645_v32 }
 0x1c6   :  { %v433_v34 = vpop.f32.mrf.mxu3 }
 0x1c7   :  { %v434_v35 = vadd.f32 %v1159_v26, %v433_v34  ;;  %v712_v36 = vsel %vm693_vm2, %v674_v33, 0.0 }
 0x1c8   :  { %v585_v37 = vpop.f32.mrf.mxu2  ;;  %713 = vadd.xlane.f32.xlu0 %v712_v36 }
 0x1c9   :  { %v462_v38 = vmax.f32 %v434_v35, 0.0  ;;  %v586_v39 = vadd.f32 %v1216_v43, %v585_v37 }
 0x1cb   :  { %v646_v40 = vmax.f32 %v586_v39, 0.0  ;;  %899 = vmatmul.msk.f32.gmra.mxu3 %vm66_vm0, %v462_v38 }
 0x1cd   :  { %v675_v41 = vmul.f32 %v1223_v48, %v646_v40 }
 0x1ce   :  { %v436_v42 = vpop.f32.mrf.mxu3 }
 0x1cf   :  { %v437_v44 = vadd.f32 %v1159_v26, %v436_v42  ;;  %v715_v45 = vsel %vm693_vm2, %v675_v41, 0.0 }
 0x1d0   :  { %v588_v46 = vpop.f32.mrf.mxu2  ;;  %716 = vadd.xlane.f32.xlu1 %v715_v45 }
 0x1d1   :  { %v463_v47 = vmax.f32 %v437_v44, 0.0  ;;  %v589_v49 = vadd.f32 %v1216_v43, %v588_v46 }
 0x1d3   :  { %v647_v50 = vmax.f32 %v589_v49, 0.0  ;;  %900 = vmatmul.msk.f32.gmra.mxu3 %vm66_vm0, %v463_v47 }
 0x1d5   :  { %v676_v51 = vmul.f32 %v1223_v48, %v647_v50 }
 0x1d7   :  { %v718_v52 = vsel %vm693_vm2, %v676_v51, 0.0 }
 0x1d8   :  { %v591_v53 = vpop.f32.mrf.mxu2  ;;  %719 = vadd.xlane.f32.xlu2 %v718_v52 }
 0x1d9   :  { %v592_v54 = vadd.f32 %v1216_v43, %v591_v53 }
 0x1db   :  { %v648_v55 = vmax.f32 %v592_v54, 0.0 }
 0x1dd   :  { %v677_v26 = vmul.f32 %v1223_v48, %v648_v55 }
 0x1df   :  { %v721_v56 = vsel %vm693_vm2, %v677_v26, 0.0 }
 0x1e0   :  { %v594_v57 = vpop.f32.mrf.mxu2  ;;  %722 = vadd.xlane.f32.xlu0 %v721_v56 }
 0x1e1   :  { %v595_v58 = vadd.f32 %v1216_v43, %v594_v57 }
 0x1e3   :  { %v649_v59 = vmax.f32 %v595_v58, 0.0 }
 0x1e5   :  { %v678_v60 = vmul.f32 %v1223_v48, %v649_v59 }
 0x1e7   :  { %v724_v61 = vsel %vm693_vm2, %v678_v60, 0.0 }
 0x1e8   :  { %v597_v62 = vpop.f32.mrf.mxu2  ;;  %725 = vadd.xlane.f32.xlu1 %v724_v61 }
 0x1e9   :  { %v598_v63 = vadd.f32 %v1216_v43, %v597_v62 }
 0x1eb   :  { %v650_v0 = vmax.f32 %v598_v63, 0.0 }
 0x1ed   :  { %v679_v1 = vmul.f32 %v1223_v48, %v650_v0 }
 0x1ef   :  { %v727_v2 = vsel %vm693_vm2, %v679_v1, 0.0 }
 0x1f0   :  { %v600_v3 = vpop.f32.mrf.mxu2  ;;  %728 = vadd.xlane.f32.xlu2 %v727_v2 }
 0x1f1   :  { %v601_v4 = vadd.f32 %v1216_v43, %v600_v3 }
 0x1f3   :  { %v651_v5 = vmax.f32 %v601_v4, 0.0 }
 0x1f5   :  { %v680_v6 = vmul.f32 %v1223_v48, %v651_v5 }
 0x1f7   :  { %v730_v7 = vsel %vm693_vm2, %v680_v6, 0.0 }
 0x1f8   :  { %v603_v8 = vpop.f32.mrf.mxu2  ;;  %731 = vadd.xlane.f32.xlu0 %v730_v7 }
 0x1f9   :  { %v604_v9 = vadd.f32 %v1216_v43, %v603_v8 }
 0x1fb   :  { %v652_v10 = vmax.f32 %v604_v9, 0.0 }
 0x1fd   :  { %v681_v11 = vmul.f32 %v1223_v48, %v652_v10 }
 0x1ff   :  { %v733_v12 = vsel %vm693_vm2, %v681_v11, 0.0 }
 0x200   :  { %v606_v13 = vpop.f32.mrf.mxu2  ;;  %734 = vadd.xlane.f32.xlu1 %v733_v12 }
 0x201   :  { %v607_v14 = vadd.f32 %v1216_v43, %v606_v13 }
 0x203   :  { %v653_v15 = vmax.f32 %v607_v14, 0.0 }
 0x205   :  { %v682_v16 = vmul.f32 %v1223_v48, %v653_v15 }
 0x207   :  { %v736_v17 = vsel %vm693_vm2, %v682_v16, 0.0 }
 0x208   :  { %v609_v18 = vpop.f32.mrf.mxu2  ;;  %737 = vadd.xlane.f32.xlu2 %v736_v17 }
 0x209   :  { %v610_v19 = vadd.f32 %v1216_v43, %v609_v18 }
 0x20b   :  { %v654_v21 = vmax.f32 %v610_v19, 0.0  ;;  %v696_v30 = vpop.xlane.xlu0 %695 }
 0x20c   :  { %v771_v22 = vadd.f32 %v1288_v20, %v696_v30 }
 0x20d   :  { %v683_v23 = vmul.f32 %v1223_v48, %v654_v21 }
 0x20e   :  { %797 = vst.msk [vmem:[%s1453_s9] sm:$0xff] %vm796_vm3, %v771_v22 }
 0x20f   :  { %v739_v24 = vsel %vm693_vm2, %v683_v23, 0.0 }
 0x210   :  { %v612_v25 = vpop.f32.mrf.mxu2  ;;  %740 = vadd.xlane.f32.xlu0 %v739_v24 }
 0x211   :  { %v613_v27 = vadd.f32 %v1216_v43, %v612_v25 }
 0x213   :  { %v655_v28 = vmax.f32 %v613_v27, 0.0  ;;  %v699_v29 = vpop.xlane.xlu0 %698 }
 0x214   :  { %v772_v31 = vadd.f32 %v1288_v20, %v699_v29 }
 0x215   :  { %v684_v32 = vmul.f32 %v1223_v48, %v655_v28 }
 0x216   :  { %798 = vst.msk [vmem:[%s1453_s9 + $0x8] sm:$0xff] %vm796_vm3, %v772_v31 }
 0x217   :  { %v742_v33 = vsel %vm693_vm2, %v684_v32, 0.0 }
 0x218   :  { %v615_v34 = vpop.f32.mrf.mxu2  ;;  %743 = vadd.xlane.f32.xlu1 %v742_v33 }
 0x219   :  { %v616_v35 = vadd.f32 %v1216_v43, %v615_v34 }
 0x21b   :  { %v656_v36 = vmax.f32 %v616_v35, 0.0  ;;  %v702_v37 = vpop.xlane.xlu1 %701 }
 0x21c   :  { %v773_v38 = vadd.f32 %v1288_v20, %v702_v37 }
 0x21d   :  { %v685_v39 = vmul.f32 %v1223_v48, %v656_v36 }
 0x21e   :  { %799 = vst.msk [vmem:[%s1453_s9 + $0x10] sm:$0xff] %vm796_vm3, %v773_v38 }
 0x21f   :  { %v745_v40 = vsel %vm693_vm2, %v685_v39, 0.0 }
 0x220   :  { %746 = vadd.xlane.f32.xlu2 %v745_v40 }
 0x223   :  { %v705_v41 = vpop.xlane.xlu1 %704 }
 0x224   :  { %v774_v42 = vadd.f32 %v1288_v20, %v705_v41 }
 0x226   :  { %800 = vst.msk [vmem:[%s1453_s9 + $0x18] sm:$0xff] %vm796_vm3, %v774_v42  ;;  %v618_v44 = vpop.f32.mrf.mxu2 }
 0x227   :  { %v619_v45 = vadd.f32 %v1216_v43, %v618_v44 }
 0x229   :  { %v657_v46 = vmax.f32 %v619_v45, 0.0 }
 0x22b   :  { %v708_v47 = vpop.xlane.xlu2 %707  ;;  %v686_v49 = vmul.f32 %v1223_v48, %v657_v46 }
 0x22c   :  { %v775_v50 = vadd.f32 %v1288_v20, %v708_v47 }
 0x22d   :  { %v748_v51 = vsel %vm693_vm2, %v686_v49, 0.0 }
 0x22e   :  { %801 = vst.msk [vmem:[%s1453_s9 + $0x20] sm:$0xff] %vm796_vm3, %v775_v50  ;;  %v621_v52 = vpop.f32.mrf.mxu3  ;;  %749 = vadd.xlane.f32.xlu0 %v748_v51 }
 0x22f   :  { %v622_v53 = vadd.f32 %v1216_v43, %v621_v52 }
 0x231   :  { %v658_v54 = vmax.f32 %v622_v53, 0.0 }
 0x233   :  { %v711_v55 = vpop.xlane.xlu2 %710  ;;  %v687_v26 = vmul.f32 %v1223_v48, %v658_v54 }
 0x234   :  { %v776_v56 = vadd.f32 %v1288_v20, %v711_v55 }
 0x235   :  { %v751_v57 = vsel %vm693_vm2, %v687_v26, 0.0 }
 0x236   :  { %802 = vst.msk [vmem:[%s1453_s9 + $0x28] sm:$0xff] %vm796_vm3, %v776_v56  ;;  %v624_v58 = vpop.f32.mrf.mxu3  ;;  %752 = vadd.xlane.f32.xlu1 %v751_v57 }
 0x237   :  { %v625_v59 = vadd.f32 %v1216_v43, %v624_v58 }
 0x239   :  { %v659_v60 = vmax.f32 %v625_v59, 0.0 }
 0x23b   :  { %v714_v61 = vpop.xlane.xlu0 %713  ;;  %v688_v62 = vmul.f32 %v1223_v48, %v659_v60 }
 0x23c   :  { %v777_v63 = vadd.f32 %v1288_v20, %v714_v61 }
 0x23d   :  { %v754_v0 = vsel %vm693_vm2, %v688_v62, 0.0 }
 0x23e   :  { %803 = vst.msk [vmem:[%s1453_s9 + $0x30] sm:$0xff] %vm796_vm3, %v777_v63  ;;  %v627_v1 = vpop.f32.mrf.mxu3  ;;  %755 = vadd.xlane.f32.xlu2 %v754_v0 }
 0x23f   :  { %v628_v2 = vadd.f32 %v1216_v43, %v627_v1 }
 0x241   :  { %v660_v3 = vmax.f32 %v628_v2, 0.0 }
 0x243   :  { %v717_v4 = vpop.xlane.xlu1 %716  ;;  %v689_v5 = vmul.f32 %v1223_v48, %v660_v3 }
 0x244   :  { %v778_v6 = vadd.f32 %v1288_v20, %v717_v4 }
 0x245   :  { %v757_v7 = vsel %vm693_vm2, %v689_v5, 0.0 }
 0x246   :  { %804 = vst.msk [vmem:[%s1453_s9 + $0x38] sm:$0xff] %vm796_vm3, %v778_v6  ;;  %v630_v8 = vpop.f32.mrf.mxu3  ;;  %758 = vadd.xlane.f32.xlu0 %v757_v7 }
 0x247   :  { %v631_v9 = vadd.f32 %v1216_v43, %v630_v8 }
 0x249   :  { %v661_v10 = vmax.f32 %v631_v9, 0.0 }
 0x24b   :  { %v720_v11 = vpop.xlane.xlu2 %719  ;;  %v690_v12 = vmul.f32 %v1223_v48, %v661_v10 }
 0x24c   :  { %v779_v13 = vadd.f32 %v1288_v20, %v720_v11 }
 0x24d   :  { %v760_v14 = vsel %vm693_vm2, %v690_v12, 0.0 }
 0x24e   :  { %805 = vst.msk [vmem:[%s1453_s9 + $0x40] sm:$0xff] %vm796_vm3, %v779_v13  ;;  %v633_v15 = vpop.f32.mrf.mxu3  ;;  %761 = vadd.xlane.f32.xlu1 %v760_v14 }
 0x24f   :  { %v634_v16 = vadd.f32 %v1216_v43, %v633_v15 }
 0x251   :  { %v662_v17 = vmax.f32 %v634_v16, 0.0 }
 0x253   :  { %v723_v18 = vpop.xlane.xlu0 %722  ;;  %v691_v19 = vmul.f32 %v1223_v48, %v662_v17 }
 0x254   :  { %v780_v21 = vadd.f32 %v1288_v20, %v723_v18 }
 0x255   :  { %v763_v30 = vsel %vm693_vm2, %v691_v19, 0.0 }
 0x256   :  { %806 = vst.msk [vmem:[%s1453_s9 + $0x48] sm:$0xff] %vm796_vm3, %v780_v21  ;;  %v636_v22 = vpop.f32.mrf.mxu3  ;;  %764 = vadd.xlane.f32.xlu2 %v763_v30 }
 0x257   :  { %v637_v23 = vadd.f32 %v1216_v43, %v636_v22 }
 0x259   :  { %v663_v24 = vmax.f32 %v637_v23, 0.0 }
 0x25b   :  { %v726_v25 = vpop.xlane.xlu1 %725  ;;  %v692_v27 = vmul.f32 %v1223_v48, %v663_v24 }
 0x25c   :  { %v781_v28 = vadd.f32 %v1288_v20, %v726_v25 }
 0x25d   :  { %v766_v29 = vsel %vm693_vm2, %v692_v27, 0.0 }
 0x25e   :  { %807 = vst.msk [vmem:[%s1453_s9 + $0x50] sm:$0xff] %vm796_vm3, %v781_v28  ;;  %767 = vadd.xlane.f32.xlu0 %v766_v29 }
 0x263   :  { %v729_v31 = vpop.xlane.xlu2 %728 }
 0x264   :  { %v782_v32 = vadd.f32 %v1288_v20, %v729_v31 }
 0x266   :  { %808 = vst.msk [vmem:[%s1453_s9 + $0x58] sm:$0xff] %vm796_vm3, %v782_v32 }
 0x26b   :  { %v732_v43 = vpop.xlane.xlu0 %731 }
 0x26c   :  { %v783_v48 = vadd.f32 %v1288_v20, %v732_v43 }
 0x26e   :  { %809 = vst.msk [vmem:[%s1453_s9 + $0x60] sm:$0xff] %vm796_vm3, %v783_v48 }
 0x273   :  { %v735_v33 = vpop.xlane.xlu1 %734 }
 0x274   :  { %v784_v34 = vadd.f32 %v1288_v20, %v735_v33 }
 0x276   :  { %810 = vst.msk [vmem:[%s1453_s9 + $0x68] sm:$0xff] %vm796_vm3, %v784_v34 }
 0x27b   :  { %v738_v35 = vpop.xlane.xlu2 %737 }
 0x27c   :  { %v785_v36 = vadd.f32 %v1288_v20, %v738_v35 }
 0x27e   :  { %811 = vst.msk [vmem:[%s1453_s9 + $0x70] sm:$0xff] %vm796_vm3, %v785_v36 }
 0x283   :  { %v741_v37 = vpop.xlane.xlu0 %740 }
 0x284   :  { %v786_v38 = vadd.f32 %v1288_v20, %v741_v37 }
 0x286   :  { %812 = vst.msk [vmem:[%s1453_s9 + $0x78] sm:$0xff] %vm796_vm3, %v786_v38 }
 0x28b   :  { %v744_v39 = vpop.xlane.xlu1 %743 }
 0x28c   :  { %v787_v40 = vadd.f32 %v1288_v20, %v744_v39 }
 0x28e   :  { %813 = vst.msk [vmem:[%s1453_s9 + $0x80] sm:$0xff] %vm796_vm3, %v787_v40 }
 0x293   :  { %v747_v41 = vpop.xlane.xlu2 %746 }
 0x294   :  { %v788_v42 = vadd.f32 %v1288_v20, %v747_v41 }
 0x296   :  { %814 = vst.msk [vmem:[%s1453_s9 + $0x88] sm:$0xff] %vm796_vm3, %v788_v42 }
 0x2a1   :  { %v750_v44 = vpop.xlane.xlu0 %749 }
 0x2a2   :  { %v789_v45 = vadd.f32 %v1288_v20, %v750_v44 }
 0x2a4   :  { %815 = vst.msk [vmem:[%s1453_s9 + $0x90] sm:$0xff] %vm796_vm3, %v789_v45 }
 0x2a9   :  { %v753_v46 = vpop.xlane.xlu1 %752 }
 0x2aa   :  { %v790_v47 = vadd.f32 %v1288_v20, %v753_v46 }
 0x2ac   :  { %816 = vst.msk [vmem:[%s1453_s9 + $0x98] sm:$0xff] %vm796_vm3, %v790_v47 }
 0x2b1   :  { %v756_v49 = vpop.xlane.xlu2 %755 }
 0x2b2   :  { %v791_v50 = vadd.f32 %v1288_v20, %v756_v49 }
 0x2b4   :  { %817 = vst.msk [vmem:[%s1453_s9 + $0xa0] sm:$0xff] %vm796_vm3, %v791_v50 }
 0x2b9   :  { %v759_v51 = vpop.xlane.xlu0 %758 }
 0x2ba   :  { %v792_v52 = vadd.f32 %v1288_v20, %v759_v51 }
 0x2bc   :  { %818 = vst.msk [vmem:[%s1453_s9 + $0xa8] sm:$0xff] %vm796_vm3, %v792_v52 }
 0x2c1   :  { %v762_v53 = vpop.xlane.xlu1 %761 }
 0x2c2   :  { %v793_v54 = vadd.f32 %v1288_v20, %v762_v53 }
 0x2c4   :  { %819 = vst.msk [vmem:[%s1453_s9 + $0xb0] sm:$0xff] %vm796_vm3, %v793_v54 }
 0x2c9   :  { %v765_v55 = vpop.xlane.xlu2 %764 }
 0x2ca   :  { %v794_v26 = vadd.f32 %v1288_v20, %v765_v55 }
 0x2cc   :  { %820 = vst.msk [vmem:[%s1453_s9 + $0xb8] sm:$0xff] %vm796_vm3, %v794_v26 }
 0x2d1   :  { %v768_v56 = vpop.xlane.xlu0 %767 }
 0x2d2   :  { %v795_v57 = vadd.f32 %v1288_v20, %v768_v56 }
 0x2d4   :  { %821 = vst.msk [vmem:[%s1453_s9 + $0xc0] sm:$0xff] %vm796_vm3, %v795_v57 }

</bundles_post_ra>
